<compile_context>
chip_gen: v5e
topology: v5e:2x2
jax: 0.10.0
libtpu: 0.0.40
codegen_flags: <defaults>
</compile_context>

<pallas_src>
import functools

import jax
import jax.numpy as jnp
from jax import lax
from jax.experimental import pallas as pl
from jax.experimental.pallas import tpu as pltpu

_EPS = 1e-5
_LANE = 128
_TARGET_BLOCK_BYTES = 4 * 1024 * 1024  # ~4 MiB x-block amortizes step overhead


# ---------------------------------------------------------------------------
# Tiling / VMEM configuration (generation aware).
# ---------------------------------------------------------------------------
@functools.lru_cache(maxsize=1)
def _vmem_limit_bytes():
    """Scoped-VMEM limit: ~96 MiB on v5e/v6e (128 MiB physical), ~48 MiB on v7x."""
    cap = None
    try:
        cap = getattr(pltpu.get_tpu_info(), "vmem_capacity_bytes", None)
    except Exception:  # defensive: fall back to a value safe on all generations
        cap = None
    if cap is not None and cap >= 128 * 1024 * 1024:
        return 96 * 1024 * 1024
    return 48 * 1024 * 1024  # safe everywhere (v7x physical VMEM is 64 MiB/TC)


def _round_down(x, m):
    return (x // m) * m


def _round_up(x, m):
    return ((x + m - 1) // m) * m


def _pick_row_tile(n_rows, lane_width, elem_bytes, vmem_limit, sublane):
    """Row tile sized in bytes, VMEM-budgeted, sublane aligned, >=2 grid steps."""
    # Double-buffered in/out blocks in the stored dtype plus ~4 live f32
    # temporaries (x_f32, centered, squared, out_f32) per element.
    per_row_vmem = lane_width * (4 * elem_bytes + 16)
    tile_bytes = _TARGET_BLOCK_BYTES // max(lane_width * elem_bytes, 1)
    tile_vmem = int(vmem_limit * 0.5) // max(per_row_vmem, 1)
    tile = max(_round_down(min(tile_bytes, tile_vmem), sublane), sublane)
    if n_rows >= 2 * sublane:
        # Guarantee at least 2 grid steps so the "parallel" axis can be
        # sharded across both TensorCores on v7x.
        half = _round_up(-(-n_rows // 2), sublane)
        tile = max(min(tile, half), sublane)
        return tile
    # Tiny problem: a single full-extent block (always layout-legal, even if
    # n_rows is not a multiple of the sublane count).
    return n_rows


# ---------------------------------------------------------------------------
# Kernel bodies.
# ---------------------------------------------------------------------------
def _standard_body(x_ref, w_ref, b_ref, o_ref):
    # x_ref: (ROW_TILE, D)   w_ref/b_ref: (1, D)   o_ref: (ROW_TILE, D)
    x = x_ref[...].astype(jnp.float32)
    mean = jnp.mean(x, axis=-1, keepdims=True)
    c = x - mean
    var = jnp.mean(c * c, axis=-1, keepdims=True)
    y = c * lax.rsqrt(var + _EPS)
    out = y * w_ref[...].astype(jnp.float32)
    if b_ref is not None:
        out = out + b_ref[...].astype(jnp.float32)
    o_ref[...] = out.astype(o_ref.dtype)


def _packed_body(x_ref, w_ref, b_ref, s_ref, o_ref, *, d):
    # x_ref: (ROW_TILE, 128) where each row packs k = 128 // d original rows.
    # w_ref/b_ref: (1, 128) = weight/bias tiled k times.
    # s_ref: (128, 128) block-diagonal matrix of ones (d x d blocks); x @ s
    # broadcasts each segment's sum to every lane of that segment.  This runs
    # on the otherwise-idle MXU (precision=HIGHEST keeps the accurate f32
    # multi-pass path) instead of an XLU roll butterfly.
    x = x_ref[...].astype(jnp.float32)
    s = s_ref[...]
    inv_d = jnp.float32(1.0 / d)  # d is a power of two -> exact
    mean = jnp.dot(x, s, precision=lax.Precision.HIGHEST,
                   preferred_element_type=jnp.float32) * inv_d
    c = x - mean
    var = jnp.dot(c * c, s, precision=lax.Precision.HIGHEST,
                  preferred_element_type=jnp.float32) * inv_d
    y = c * lax.rsqrt(var + _EPS)
    out = y * w_ref[...].astype(jnp.float32)
    if b_ref is not None:
        out = out + b_ref[...].astype(jnp.float32)
    o_ref[...] = out.astype(o_ref.dtype)


def _make_kernel(use_bias, packed, d):
    if packed:
        if use_bias:
            def kernel(x_ref, w_ref, b_ref, s_ref, o_ref):
                _packed_body(x_ref, w_ref, b_ref, s_ref, o_ref, d=d)
        else:
            def kernel(x_ref, w_ref, s_ref, o_ref):
                _packed_body(x_ref, w_ref, None, s_ref, o_ref, d=d)
    else:
        if use_bias:
            def kernel(x_ref, w_ref, b_ref, o_ref):
                _standard_body(x_ref, w_ref, b_ref, o_ref)
        else:
            def kernel(x_ref, w_ref, o_ref):
                _standard_body(x_ref, w_ref, None, o_ref)
    return kernel


# ---------------------------------------------------------------------------
# Wrapper.
# ---------------------------------------------------------------------------
@functools.partial(jax.jit, static_argnames=("has_bias",))
def layer_norm(x, weight, bias=None, *, has_bias=True):
    """LayerNorm over the last axis of x, with weight and optional bias."""
    orig_shape = x.shape
    d = orig_shape[-1]
    rows = 1
    for dim in orig_shape[:-1]:
        rows *= dim
    if rows == 0 or d == 0:
        return x

    dtype = x.dtype
    elem_bytes = dtype.itemsize
    sublane = max(8, 32 // elem_bytes)  # f32: 8, bf16: 16, int8/fp8: 32
    vmem_limit = _vmem_limit_bytes()
    use_bias = has_bias and bias is not None

    # Lane-dense packing for small hidden sizes: fold k = 128 // d rows into a
    # single 128-wide kernel row.  Rows are padded up to a multiple of k (at
    # most k-1 extra rows) so the packed path is never silently dropped.
    # (d < 128 with 128 % d != 0 still falls back to masked <128-lane stores.)
    packed = (d < _LANE) and (_LANE % d == 0)
    if packed:
        k = _LANE // d
        pad_rows = (-rows) % k
        x_flat = x.reshape(rows, d)
        if pad_rows:
            x_flat = jnp.pad(x_flat, ((0, pad_rows), (0, 0)))
        n_rows = (rows + pad_rows) // k
        lane_width = _LANE
        x2 = x_flat.reshape(n_rows, lane_width)
        w2 = jnp.tile(weight.reshape(1, d), (1, k))
        b2 = jnp.tile(bias.reshape(1, d), (1, k)) if use_bias else None
        lane = jnp.arange(_LANE, dtype=jnp.int32)
        seg = (lane[:, None] // d == lane[None, :] // d).astype(jnp.float32)
    else:
        k = 1
        pad_rows = 0
        lane_width = d
        n_rows = rows
        x2 = x.reshape(n_rows, d)
        w2 = weight.reshape(1, d)
        b2 = bias.reshape(1, d) if use_bias else None
        seg = None

    row_tile = _pick_row_tile(n_rows, lane_width, elem_bytes, vmem_limit, sublane)
    grid = (pl.cdiv(n_rows, row_tile),)  # ragged last block handled by masking

    in_specs = [pl.BlockSpec((row_tile, lane_width), lambda i: (i, 0)),
                pl.BlockSpec((1, lane_width), lambda i: (0, 0))]
    args = [x2, w2]
    if use_bias:
        in_specs.append(pl.BlockSpec((1, lane_width), lambda i: (0, 0)))
        args.append(b2)
    if packed:
        in_specs.append(pl.BlockSpec((_LANE, _LANE), lambda i: (0, 0)))
        args.append(seg)

    kernel = _make_kernel(use_bias, packed, d)

    out = pl.pallas_call(
        kernel,
        out_shape=jax.ShapeDtypeStruct((n_rows, lane_width), dtype),
        grid_spec=pltpu.PrefetchScalarGridSpec(
            num_scalar_prefetch=0,
            grid=grid,
            in_specs=in_specs,
            out_specs=pl.BlockSpec((row_tile, lane_width), lambda i: (i, 0)),
        ),
        compiler_params=pltpu.CompilerParams(
            dimension_semantics=("parallel",),
            vmem_limit_bytes=vmem_limit,
        ),
    )(*args)

    if packed:
        out = out.reshape(n_rows * k, d)
        if pad_rows:
            out = out[:rows]
    return out.reshape(orig_shape)


# ---------------------------------------------------------------------------
# Reference + self-test.
# ---------------------------------------------------------------------------
def _reference_layer_norm(x, weight, bias):
    xf = x.astype(jnp.float32)
    mean = jnp.mean(xf, axis=-1, keepdims=True)
    var = jnp.mean((xf - mean) ** 2, axis=-1, keepdims=True)
    y = (xf - mean) / jnp.sqrt(var + _EPS)
    y = y * weight.astype(jnp.float32)
    if bias is not None:
        y = y + bias.astype(jnp.float32)
    return y.astype(x.dtype)


if __name__ == "__main__":
    key = jax.random.PRNGKey(0)
    batch, seq, hidden = 2, 8, 32

    x = jax.random.normal(key, (batch, seq, hidden), dtype=jnp.float32)

    # Deterministic parameters matching the module's __init__:
    #   weight = ones(ndim), bias = zeros(ndim)  (bias=True case)
    weight = jnp.ones((hidden,), dtype=jnp.float32)
    bias = jnp.zeros((hidden,), dtype=jnp.float32)

    out = jax.block_until_ready(layer_norm(x, weight, bias, has_bias=True))
    ref = _reference_layer_norm(x, weight, bias)
    assert out.shape == x.shape
    assert jnp.allclose(out, ref, atol=1e-3, rtol=1e-3), "mismatch (packed, bias)"

    # bias=False path (module constructed with bias=False).
    out_nb = jax.block_until_ready(layer_norm(x, weight, None, has_bias=False))
    ref_nb = _reference_layer_norm(x, weight, None)
    assert jnp.allclose(out_nb, ref_nb, atol=1e-3, rtol=1e-3), "mismatch (packed, no bias)"

    # Packed path with rows % k != 0 (row padding) and a ragged multi-step grid.
    x3 = jax.random.normal(jax.random.PRNGKey(1), (5, 7, 64), dtype=jnp.float32)
    w3 = jax.random.normal(jax.random.PRNGKey(2), (64,), dtype=jnp.float32)
    b3 = jax.random.normal(jax.random.PRNGKey(3), (64,), dtype=jnp.float32)
    out3 = jax.block_until_ready(layer_norm(x3, w3, b3, has_bias=True))
    ref3 = _reference_layer_norm(x3, w3, b3)
    assert jnp.allclose(out3, ref3, atol=1e-3, rtol=1e-3), "mismatch (packed, padded)"

    # Standard (D >= 128) path: single ragged block and a multi-step grid.
    d2 = 256
    x4 = jax.random.normal(jax.random.PRNGKey(4), (3, 5, d2), dtype=jnp.float32)
    w4 = jax.random.normal(jax.random.PRNGKey(5), (d2,), dtype=jnp.float32)
    b4 = jax.random.normal(jax.random.PRNGKey(6), (d2,), dtype=jnp.float32)
    out4 = jax.block_until_ready(layer_norm(x4, w4, b4, has_bias=True))
    ref4 = _reference_layer_norm(x4, w4, b4)
    assert jnp.allclose(out4, ref4, atol=2e-5, rtol=2e-5), "mismatch (standard, small)"

    x5 = jax.random.normal(jax.random.PRNGKey(7), (4, 32, d2), dtype=jnp.float32)
    out5 = jax.block_until_ready(layer_norm(x5, w4, b4, has_bias=True))
    ref5 = _reference_layer_norm(x5, w4, b4)
    assert jnp.allclose(out5, ref5, atol=2e-5, rtol=2e-5), "mismatch (standard, multi-block)"

    print("KERNEL_OK")
</pallas_src>

<mosaic_0001>
module attributes {stable_mosaic.version = 11 : i64} {
  func.func @kernel(%arg0: i32, %arg1: memref<4x128xf32, #tpu.memory_space<vmem>>, %arg2: memref<1x128xf32, #tpu.memory_space<vmem>>, %arg3: memref<1x128xf32, #tpu.memory_space<vmem>>, %arg4: memref<128x128xf32, #tpu.memory_space<vmem>>, %arg5: memref<4x128xf32, #tpu.memory_space<vmem>>) attributes {dimension_semantics = [#tpu.dimension_semantics<parallel>], iteration_bounds = array<i64: 1>, scalar_prefetch = 0 : i64, scratch_operands = 0 : i64, tpu.core_type = #tpu.core_type<tc>, window_params = [{transform_indices = @transform_0, window_bounds = array<i64: 4, 128>}, {pipeline_mode = #tpu.pipeline_mode<synchronous>, transform_indices = @transform_1, window_bounds = array<i64: 1, 128>}, {pipeline_mode = #tpu.pipeline_mode<synchronous>, transform_indices = @transform_2, window_bounds = array<i64: 1, 128>}, {pipeline_mode = #tpu.pipeline_mode<synchronous>, transform_indices = @transform_3, window_bounds = array<i64: 128, 128>}, {transform_indices = @transform_4, window_bounds = array<i64: 4, 128>}]} {
    %c0 = arith.constant 0 : index
    %c0_0 = arith.constant 0 : index
    %0 = vector.load %arg1[%c0, %c0_0] : memref<4x128xf32, #tpu.memory_space<vmem>>, vector<4x128xf32>
    %c0_1 = arith.constant 0 : index
    %c0_2 = arith.constant 0 : index
    %1 = vector.load %arg4[%c0_1, %c0_2] : memref<128x128xf32, #tpu.memory_space<vmem>>, vector<128x128xf32>
    %cst = arith.constant dense<0.000000e+00> : vector<4x128xf32>
    %2 = tpu.matmul %0, %1, %cst {dimension_numbers = #tpu.dot_dimension_numbers<[1], [0], [0], [1], [0, 0, 1, 1], [], []>, precision = #tpu.contract_precision<fp32>} : vector<4x128xf32>, vector<128x128xf32>, vector<4x128xf32> -> vector<4x128xf32>
    %cst_3 = arith.constant 3.125000e-02 : f32
    %3 = vector.broadcast %cst_3 : f32 to vector<4x128xf32>
    %4 = arith.mulf %2, %3 : vector<4x128xf32>
    %5 = arith.subf %0, %4 : vector<4x128xf32>
    %6 = arith.mulf %5, %5 : vector<4x128xf32>
    %cst_4 = arith.constant dense<0.000000e+00> : vector<4x128xf32>
    %7 = tpu.matmul %6, %1, %cst_4 {dimension_numbers = #tpu.dot_dimension_numbers<[1], [0], [0], [1], [0, 0, 1, 1], [], []>, precision = #tpu.contract_precision<fp32>} : vector<4x128xf32>, vector<128x128xf32>, vector<4x128xf32> -> vector<4x128xf32>
    %cst_5 = arith.constant 3.125000e-02 : f32
    %8 = vector.broadcast %cst_5 : f32 to vector<4x128xf32>
    %9 = arith.mulf %7, %8 : vector<4x128xf32>
    %cst_6 = arith.constant 9.99999974E-6 : f32
    %10 = vector.broadcast %cst_6 : f32 to vector<4x128xf32>
    %11 = arith.addf %9, %10 : vector<4x128xf32>
    %12 = math.rsqrt %11 : vector<4x128xf32>
    %13 = arith.mulf %5, %12 : vector<4x128xf32>
    %c0_7 = arith.constant 0 : index
    %c0_8 = arith.constant 0 : index
    %14 = vector.load %arg2[%c0_7, %c0_8] : memref<1x128xf32, #tpu.memory_space<vmem>>, vector<1x128xf32>
    %15 = vector.broadcast %14 : vector<1x128xf32> to vector<4x128xf32>
    %16 = arith.mulf %13, %15 : vector<4x128xf32>
    %c0_9 = arith.constant 0 : index
    %c0_10 = arith.constant 0 : index
    %17 = vector.load %arg3[%c0_9, %c0_10] : memref<1x128xf32, #tpu.memory_space<vmem>>, vector<1x128xf32>
    %18 = vector.broadcast %17 : vector<1x128xf32> to vector<4x128xf32>
    %19 = arith.addf %16, %18 : vector<4x128xf32>
    %c0_11 = arith.constant 0 : index
    %c0_12 = arith.constant 0 : index
    %20 = vector.load %arg5[%c0_11, %c0_12] : memref<4x128xf32, #tpu.memory_space<vmem>>, vector<4x128xf32>
    tpu.vector_store %arg5[%c0_11, %c0_12], %19 {strides = array<i32>} : memref<4x128xf32, #tpu.memory_space<vmem>>, vector<4x128xf32>,
    return
  }
  func.func @transform_0(%arg0: i32) -> (i32, i32) {
    %c0_i32 = arith.constant 0 : i32
    %c0_i32_0 = arith.constant 0 : i32
    return %arg0, %c0_i32 : i32, i32
  }
  func.func @transform_1(%arg0: i32) -> (i32, i32) {
    %c0_i32 = arith.constant 0 : i32
    %c0_i32_0 = arith.constant 0 : i32
    %c0_i32_1 = arith.constant 0 : i32
    return %c0_i32, %c0_i32_0 : i32, i32
  }
  func.func @transform_2(%arg0: i32) -> (i32, i32) {
    %c0_i32 = arith.constant 0 : i32
    %c0_i32_0 = arith.constant 0 : i32
    %c0_i32_1 = arith.constant 0 : i32
    return %c0_i32, %c0_i32_0 : i32, i32
  }
  func.func @transform_3(%arg0: i32) -> (i32, i32) {
    %c0_i32 = arith.constant 0 : i32
    %c0_i32_0 = arith.constant 0 : i32
    %c0_i32_1 = arith.constant 0 : i32
    return %c0_i32, %c0_i32_0 : i32, i32
  }
  func.func @transform_4(%arg0: i32) -> (i32, i32) {
    %c0_i32 = arith.constant 0 : i32
    %c0_i32_0 = arith.constant 0 : i32
    return %arg0, %c0_i32 : i32, i32
  }
}

</mosaic_0001>

<bundles_post_ra>
// kernel: layer_norm.1
= control target key start
LH: loop header
LB: loop body
LE: loop exit
PB: predicated region body
PF: predicated region fallthrough
CT: control target
= control target key end

     0   :  { %s1231_s3 = inlined_call_operand.vmem [shape: f32[128,128], index: 3, kind: input, shape index: {}]   ;;  %s1232_s0 = inlined_call_operand.vmem [shape: f32[4,128], index: 0, kind: input, shape index: {}]   ;;  %s1233_s1 = inlined_call_operand.vmem [shape: f32[1,128], index: 1, kind: input, shape index: {}]   ;;  %s1234_s2 = inlined_call_operand.vmem [shape: f32[1,128], index: 2, kind: input, shape index: {}]   ;;  %s1235_s4 = inlined_call_operand.vmem [shape: f32[4,128], index: 4, kind: output, shape index: {}]  }
   0x1   :  { %v33_v0 = vld [vmem:[%s1231_s3 + $0x78] sm:$0xff]  ;;  %v32_v1 = vld [vmem:[%s1231_s3 + $0x70] sm:$0xff]  ;;  %v31_v2 = vld [vmem:[%s1231_s3 + $0x68] sm:$0xff] }
   0x2   :  { %v785_v3 = vand.u32 4294901760, %v33_v0  ;;  %v787_v4 = vand.u32 4294901760, %v32_v1  ;;  %v789_v5 = vand.u32 4294901760, %v31_v2  ;;  %v30_v6 = vld [vmem:[%s1231_s3 + $0x60] sm:$0xff]  ;;  %v29_v7 = vld [vmem:[%s1231_s3 + $0x58] sm:$0xff]  ;;  %v28_v8 = vld [vmem:[%s1231_s3 + $0x50] sm:$0xff] }
   0x3   :  { %v800_v9 = vand.u32 4294901760, %v30_v6  ;;  %v802_v10 = vand.u32 4294901760, %v29_v7  ;;  %v804_v11 = vand.u32 4294901760, %v28_v8  ;;  %v27_v12 = vld [vmem:[%s1231_s3 + $0x48] sm:$0xff]  ;;  %v26_v13 = vld [vmem:[%s1231_s3 + $0x40] sm:$0xff]  ;;  %v25_v18 = vld [vmem:[%s1231_s3 + $0x38] sm:$0xff] }
   0x4   :  { %35 = vmatpush.msra.mxu0 %v785_v3  ;;  %v814_v14 = vsub.f32 %v33_v0, %v785_v3  ;;  %v817_v15 = vsub.f32 %v32_v1, %v787_v4  ;;  %v820_v16 = vsub.f32 %v31_v2, %v789_v5  ;;  %v822_v17 = vand.u32 4294901760, %v27_v12  ;;  %231 = vmatpush.msra.mxu3 %v785_v3  ;;  %v24_v26 = vld [vmem:[%s1231_s3 + $0x30] sm:$0xff]  ;;  %v23_v36 = vld [vmem:[%s1231_s3 + $0x28] sm:$0xff]  ;;  %v22_v42 = vld [vmem:[%s1231_s3 + $0x20] sm:$0xff] }
   0x5   :  { %v829_v19 = vsub.f32 %v30_v6, %v800_v9  ;;  %v832_v20 = vsub.f32 %v29_v7, %v802_v10  ;;  %v835_v21 = vsub.f32 %v28_v8, %v804_v11  ;;  %v847_v25 = vand.u32 4294901760, %v26_v13  ;;  %v21_v47 = vld [vmem:[%s1231_s3 + $0x18] sm:$0xff]  ;;  %v20_v55 = vld [vmem:[%s1231_s3 + $0x10] sm:$0xff]  ;;  %v19_v60 = vld [vmem:[%s1231_s3 + $0x8] sm:$0xff] }
   0x6   :  { %37 = vmatpush.msra.mxu0 %v787_v4  ;;  %v839_v22 = vand.u32 4294901760, %v814_v14  ;;  %v842_v23 = vand.u32 4294901760, %v817_v15  ;;  %v845_v24 = vand.u32 4294901760, %v820_v16  ;;  %178 = vmatpush.msra.mxu2 %v814_v14  ;;  %v856_v28 = vand.u32 4294901760, %v25_v18  ;;  %v18_v1 = vld [vmem:[%s1231_s3] sm:$0xff] }
   0x7   :  { %v854_v27 = vand.u32 4294901760, %v829_v19  ;;  %v859_v29 = vsub.f32 %v27_v12, %v822_v17  ;;  %233 = vmatpush.msra.mxu3 %v787_v4  ;;  %v870_v33 = vand.u32 4294901760, %v832_v20  ;;  %v874_v34 = vand.u32 4294901760, %v835_v21  ;;  %v981_v7 = vld [vmem:[%s1232_s0] sm:$0xf] }
   0x8   :  { %39 = vmatpush.msra.mxu0 %v789_v5  ;;  %v78_v30 = vsub.f32 %v814_v14, %v839_v22  ;;  %v84_v31 = vsub.f32 %v817_v15, %v842_v23  ;;  %v90_v32 = vsub.f32 %v820_v16, %v845_v24  ;;  %181 = vmatpush.msra.mxu2 %v817_v15  ;;  %v876_v35 = vand.u32 4294901760, %v24_v26 }
   0x9   :  { %235 = vmatpush.msra.mxu3 %v789_v5  ;;  %v96_v39 = vsub.f32 %v829_v19, %v854_v27  ;;  %v890_v40 = vsub.f32 %v26_v13, %v847_v25  ;;  %v894_v41 = vand.u32 4294901760, %v859_v29  ;;  %v102_v44 = vsub.f32 %v832_v20, %v870_v33  ;;  %1250 = vst [vmem:[#allocation8_spill] sm:$0xff] %v981_v7 }
   0xa   :  { %v882_v37 = vand.u32 4294901760, %v78_v30  ;;  %41 = vmatpush.msra.mxu0 %v800_v9  ;;  %v885_v38 = vand.u32 4294901760, %v84_v31  ;;  %184 = vmatpush.msra.mxu2 %v820_v16  ;;  %v902_v43 = vand.u32 4294901760, %v90_v32  ;;  %v906_v45 = vand.u32 4294901760, %v23_v36 }
   0xb   :  { %1244 = vst [vmem:[#allocation2_spill] sm:$0xff] %v890_v40  ;;  %237 = vmatpush.msra.mxu3 %v800_v9  ;;  %v909_v46 = vsub.f32 %v25_v18, %v856_v28  ;;  %v108_v48 = vsub.f32 %v835_v21, %v874_v34  ;;  %v920_v49 = vand.u32 4294901760, %v96_v39  ;;  %v923_v50 = vand.u32 4294901760, %v890_v40 }
   0xc   :  { %80 = vmatpush.msra.mxu1 %v882_v37  ;;  %43 = vmatpush.msra.mxu0 %v802_v10  ;;  %v925_v51 = vand.u32 4294901760, %v22_v42  ;;  %v928_v52 = vsub.f32 %v24_v26, %v876_v35  ;;  %v114_v53 = vsub.f32 %v859_v29, %v894_v41  ;;  %v932_v54 = vand.u32 4294901760, %v21_v47 }
   0xd   :  { %1245 = vst [vmem:[#allocation3_spill] sm:$0xff] %v909_v46  ;;  %187 = vmatpush.msra.mxu2 %v829_v19  ;;  %239 = vmatpush.msra.mxu3 %v802_v10  ;;  %v941_v56 = vand.u32 4294901760, %v102_v44  ;;  %v944_v57 = vand.u32 4294901760, %v909_v46  ;;  %v947_v58 = vsub.f32 %v23_v36, %v906_v45  ;;  %v949_v59 = vand.u32 4294901760, %v108_v48 }
   0xe   :  { %86 = vmatpush.msra.mxu1 %v885_v38  ;;  %45 = vmatpush.msra.mxu0 %v804_v11  ;;  %1246 = vst [vmem:[#allocation4_spill] sm:$0xff] %v928_v52  ;;  %v120_v61 = vsub.f32 %v890_v40, %v923_v50  ;;  %v961_v62 = vand.u32 4294901760, %v928_v52  ;;  %v963_v63 = vand.u32 4294901760, %v20_v55  ;;  %v966_v0 = vsub.f32 %v22_v42, %v925_v51 }
   0xf   :  { %190 = vmatpush.msra.mxu2 %v832_v20  ;;  %241 = vmatpush.msra.mxu3 %v804_v11  ;;  %1247 = vst [vmem:[#allocation5_spill] sm:$0xff] %v947_v58  ;;  %v971_v2 = vand.u32 4294901760, %v114_v53  ;;  %v974_v6 = vsub.f32 %v21_v47, %v932_v54  ;;  %v126_v8 = vsub.f32 %v909_v46, %v944_v57  ;;  %v988_v12 = vand.u32 4294901760, %v947_v58 }
  0x10   :  { %92 = vmatpush.msra.mxu1 %v902_v43  ;;  %47 = vmatpush.msra.mxu0 %v822_v17  ;;  %1248 = vst [vmem:[#allocation6_spill] sm:$0xff] %v966_v0  ;;  %v990_v13 = vand.u32 4294901760, %v19_v60  ;;  %v993_v18 = vand.u32 4294901760, %v981_v7  ;;  %v995_v26 = vand.u32 4294901760, %v18_v1  ;;  %v1001_v30 = vand.u32 4294901760, %v120_v61 }
  0x11   :  { %193 = vmatpush.msra.mxu2 %v835_v21  ;;  %243 = vmatpush.msra.mxu3 %v822_v17  ;;  %1249 = vst [vmem:[#allocation7_spill] sm:$0xff] %v974_v6  ;;  %v132_v31 = vsub.f32 %v928_v52, %v961_v62  ;;  %v1006_v32 = vand.u32 4294901760, %v966_v0  ;;  %v1009_v36 = vsub.f32 %v20_v55, %v963_v63  ;;  %v1012_v39 = vand.u32 4294901760, %v974_v6 }
  0x12   :  { %98 = vmatpush.msra.mxu1 %v920_v49  ;;  %49 = vmatpush.msra.mxu0 %v847_v25  ;;  %v1018_v42 = vand.u32 4294901760, %v126_v8  ;;  %v138_v44 = vsub.f32 %v947_v58, %v988_v12  ;;  %v1023_v47 = vsub.f32 %v19_v60, %v990_v13  ;;  %v67_v48 = vsub.f32 %v981_v7, %v993_v18 }
  0x13   :  { %196 = vmatpush.msra.mxu2 %v859_v29  ;;  %245 = vmatpush.msra.mxu3 %v847_v25  ;;  %1251 = vst [vmem:[#allocation9_spill] sm:$0xff] %v1009_v36  ;;  %v1031_v53 = vand.u32 4294901760, %v132_v31  ;;  %v144_v55 = vsub.f32 %v966_v0, %v1006_v32  ;;  %v1036_v61 = vand.u32 4294901760, %v1009_v36  ;;  %v1039_v60 = vsub.f32 %v18_v1, %v995_v26 }
  0x14   :  { %104 = vmatpush.msra.mxu1 %v941_v56  ;;  %51 = vmatpush.msra.mxu0 %v856_v28  ;;  %v1045_v8 = vand.u32 4294901760, %v138_v44  ;;  %v150_v31 = vsub.f32 %v974_v6, %v1012_v39  ;;  %v1050_v7 = vand.u32 4294901760, %v1023_v47 }
  0x15   :  { %199 = vmatpush.msra.mxu2 %v890_v40  ;;  %247 = vmatpush.msra.mxu3 %v856_v28  ;;  %v1056_v1 = vand.u32 4294901760, %v144_v55  ;;  %v156_v44 = vsub.f32 %v1009_v36, %v1036_v61 }
  0x16   :  { %110 = vmatpush.msra.mxu1 %v949_v59  ;;  %53 = vmatpush.msra.mxu0 %v876_v35  ;;  %v162_v55 = vsub.f32 %v1023_v47, %v1050_v7 }
  0x17   :  { %202 = vmatpush.msra.mxu2 %v909_v46  ;;  %249 = vmatpush.msra.mxu3 %v876_v35 }
  0x18   :  { %116 = vmatpush.msra.mxu1 %v971_v2  ;;  %55 = vmatpush.msra.mxu0 %v906_v45 }
  0x19   :  { %205 = vmatpush.msra.mxu2 %v928_v52  ;;  %251 = vmatpush.msra.mxu3 %v906_v45  ;;  %v68_v52 = vand.u32 4294901760, %v67_v48 }
  0x1a   :  { %122 = vmatpush.msra.mxu1 %v1001_v30  ;;  %57 = vmatpush.msra.mxu0 %v925_v51 }
  0x1b   :  { %208 = vmatpush.msra.mxu2 %v947_v58  ;;  %253 = vmatpush.msra.mxu3 %v925_v51  ;;  %v1061_v58 = vand.u32 4294901760, %v1039_v60  ;;  %v69_v46 = vsub.f32 %v67_v48, %v68_v52 }
  0x1c   :  { %128 = vmatpush.msra.mxu1 %v1018_v42  ;;  %59 = vmatpush.msra.mxu0 %v932_v54 }
  0x1d   :  { %211 = vmatpush.msra.mxu2 %v966_v0  ;;  %255 = vmatpush.msra.mxu3 %v932_v54  ;;  %v1067_v0 = vand.u32 4294901760, %v150_v31  ;;  %v168_v40 = vsub.f32 %v1039_v60, %v1061_v58  ;;  %v1082_v31 = vand.u32 4294901760, %v162_v55 }
  0x1e   :  { %134 = vmatpush.msra.mxu1 %v1031_v53  ;;  %61 = vmatpush.msra.mxu0 %v963_v63 }
  0x1f   :  { %214 = vmatpush.msra.mxu2 %v974_v6  ;;  %257 = vmatpush.msra.mxu3 %v963_v63  ;;  %v1075_v6 = vand.u32 4294901760, %v156_v44  ;;  %v1088_v44 = vand.u32 4294901760, %v168_v40 }
  0x20   :  { %140 = vmatpush.msra.mxu1 %v1045_v8  ;;  %63 = vmatpush.msra.mxu0 %v990_v13 }
  0x21   :  { %217 = vmatpush.msra.mxu2 %v1009_v36  ;;  %259 = vmatpush.msra.mxu3 %v990_v13  ;;  %v70_v36 = vand.u32 4294901760, %v69_v46 }
  0x22   :  { %146 = vmatpush.msra.mxu1 %v1056_v1  ;;  %65 = vmatpush.msra.mxu0 %v995_v26 }
  0x23   :  { %220 = vmatpush.msra.mxu2 %v1023_v47  ;;  %261 = vmatpush.msra.mxu3 %v995_v26 }
  0x24   :  { %272 = vmatpush.msrb.mxu0 %v839_v22  ;;  %152 = vmatpush.msra.mxu1 %v1067_v0 }
  0x25   :  { %223 = vmatpush.msra.mxu2 %v1039_v60  ;;  %265 = vmatmul.f32.vlgmr.msra.gmra.mxu3 %v68_v52 }
  0x26   :  { %276 = vmatpush.msrb.mxu0 %v842_v23  ;;  %158 = vmatpush.msra.mxu1 %v1075_v6 }
  0x27   :  { %226 = vmatmul.f32.vlgmr.msra.gmra.mxu2 %v67_v48  ;;  %71 = vmatmul.f32.vlgmr.msra.gmra.mxu0 %v70_v36 }
  0x28   :  { %280 = vmatpush.msrb.mxu0 %v845_v24  ;;  %164 = vmatpush.msra.mxu1 %v1082_v31 }
  0x29   :  { %424 = vmatpush.msrb.mxu3 %v882_v37  ;;  %379 = vmatpush.msrb.mxu2 %v785_v3 }
  0x2a   :  { %284 = vmatpush.msrb.mxu0 %v854_v27  ;;  %170 = vmatpush.msra.mxu1 %v1088_v44 }
  0x2b   :  { %172 = vmatmul.f32.vlgmr.msra.gmra.mxu1 %v993_v18  ;;  %430 = vmatpush.msrb.mxu3 %v885_v38 }
  0x2c   :  { %339 = vmatpush.msrb.mxu1 %v785_v3  ;;  %288 = vmatpush.msrb.mxu0 %v870_v33 }
  0x2d   :  { %436 = vmatpush.msrb.mxu3 %v902_v43  ;;  %381 = vmatpush.msrb.mxu2 %v787_v4 }
  0x2e   :  { %341 = vmatpush.msrb.mxu1 %v787_v4  ;;  %292 = vmatpush.msrb.mxu0 %v874_v34 }
  0x2f   :  { %442 = vmatpush.msrb.mxu3 %v920_v49  ;;  %383 = vmatpush.msrb.mxu2 %v789_v5 }
  0x30   :  { %343 = vmatpush.msrb.mxu1 %v789_v5  ;;  %296 = vmatpush.msrb.mxu0 %v894_v41 }
  0x31   :  { %448 = vmatpush.msrb.mxu3 %v941_v56  ;;  %385 = vmatpush.msrb.mxu2 %v800_v9 }
  0x32   :  { %345 = vmatpush.msrb.mxu1 %v800_v9  ;;  %300 = vmatpush.msrb.mxu0 %v923_v50 }
  0x33   :  { %454 = vmatpush.msrb.mxu3 %v949_v59  ;;  %387 = vmatpush.msrb.mxu2 %v802_v10 }
  0x34   :  { %347 = vmatpush.msrb.mxu1 %v802_v10  ;;  %304 = vmatpush.msrb.mxu0 %v944_v57 }
  0x35   :  { %460 = vmatpush.msrb.mxu3 %v971_v2  ;;  %389 = vmatpush.msrb.mxu2 %v804_v11 }
  0x36   :  { %349 = vmatpush.msrb.mxu1 %v804_v11  ;;  %308 = vmatpush.msrb.mxu0 %v961_v62 }
  0x37   :  { %466 = vmatpush.msrb.mxu3 %v1001_v30  ;;  %391 = vmatpush.msrb.mxu2 %v822_v17  ;;  %v748_v30 = vld [vmem:[%s1234_s2] ss:$0 sm:$0xff] }
  0x38   :  { %351 = vmatpush.msrb.mxu1 %v822_v17  ;;  %312 = vmatpush.msrb.mxu0 %v988_v12 }
  0x39   :  { %472 = vmatpush.msrb.mxu3 %v1018_v42  ;;  %393 = vmatpush.msrb.mxu2 %v847_v25 }
  0x3a   :  { %353 = vmatpush.msrb.mxu1 %v847_v25  ;;  %316 = vmatpush.msrb.mxu0 %v1006_v32 }
  0x3b   :  { %478 = vmatpush.msrb.mxu3 %v1031_v53  ;;  %395 = vmatpush.msrb.mxu2 %v856_v28 }
  0x3c   :  { %355 = vmatpush.msrb.mxu1 %v856_v28  ;;  %320 = vmatpush.msrb.mxu0 %v1012_v39 }
  0x3d   :  { %484 = vmatpush.msrb.mxu3 %v1045_v8  ;;  %397 = vmatpush.msrb.mxu2 %v876_v35 }
  0x3e   :  { %357 = vmatpush.msrb.mxu1 %v876_v35  ;;  %324 = vmatpush.msrb.mxu0 %v1036_v61 }
  0x3f   :  { %490 = vmatpush.msrb.mxu3 %v1056_v1  ;;  %399 = vmatpush.msrb.mxu2 %v906_v45 }
  0x40   :  { %359 = vmatpush.msrb.mxu1 %v906_v45  ;;  %328 = vmatpush.msrb.mxu0 %v1050_v7 }
  0x41   :  { %496 = vmatpush.msrb.mxu3 %v1067_v0  ;;  %401 = vmatpush.msrb.mxu2 %v925_v51 }
  0x42   :  { %361 = vmatpush.msrb.mxu1 %v925_v51  ;;  %332 = vmatpush.msrb.mxu0 %v1061_v58 }
  0x43   :  { %334 = vmatmul.f32.vlgmr.msrb.gmra.mxu0 %v993_v18  ;;  %502 = vmatpush.msrb.mxu3 %v1075_v6 }
  0x44   :  { %363 = vmatpush.msrb.mxu1 %v932_v54  ;;  %522 = vmatpush.msra.mxu0 %v814_v14  ;;  %v1258_v14 = vld [vmem:[#allocation9_spill] sm:$0xff] }
  0x45   :  { %508 = vmatpush.msrb.mxu3 %v1082_v31  ;;  %403 = vmatpush.msrb.mxu2 %v932_v54 }
  0x46   :  { %365 = vmatpush.msrb.mxu1 %v963_v63  ;;  %525 = vmatpush.msra.mxu0 %v817_v15 }
  0x47   :  { %514 = vmatpush.msrb.mxu3 %v1088_v44  ;;  %405 = vmatpush.msrb.mxu2 %v963_v63 }
  0x48   :  { %367 = vmatpush.msrb.mxu1 %v990_v13  ;;  %528 = vmatpush.msra.mxu0 %v820_v16 }
  0x49   :  { %683 = vmatpush.msra.mxu3 %v785_v3  ;;  %407 = vmatpush.msrb.mxu2 %v990_v13 }
  0x4a   :  { %369 = vmatpush.msrb.mxu1 %v995_v26  ;;  %531 = vmatpush.msra.mxu0 %v829_v19 }
  0x4b   :  { %371 = vmatmul.f32.vlgmr.msrb.gmra.mxu1 %v993_v18  ;;  %685 = vmatpush.msra.mxu3 %v787_v4 }
  0x4c   :  { %575 = vmatpush.msra.mxu1 %v785_v3  ;;  %534 = vmatpush.msra.mxu0 %v832_v20  ;;  %v1252_v3 = vld [vmem:[#allocation2_spill] sm:$0xff] }
  0x4d   :  { %687 = vmatpush.msra.mxu3 %v789_v5  ;;  %409 = vmatpush.msrb.mxu2 %v995_v26 }
  0x4e   :  { %577 = vmatpush.msra.mxu1 %v787_v4  ;;  %537 = vmatpush.msra.mxu0 %v835_v21  ;;  %v1253_v4 = vld [vmem:[#allocation3_spill] sm:$0xff] }
  0x4f   :  { %689 = vmatpush.msra.mxu3 %v800_v9  ;;  %616 = vmatpush.msra.mxu2 %v839_v22 }
  0x50   :  { %579 = vmatpush.msra.mxu1 %v789_v5  ;;  %540 = vmatpush.msra.mxu0 %v859_v29  ;;  %v1254_v5 = vld [vmem:[#allocation4_spill] sm:$0xff] }
  0x51   :  { %691 = vmatpush.msra.mxu3 %v802_v10  ;;  %620 = vmatpush.msra.mxu2 %v842_v23  ;;  %v1259_v29 = vld [vmem:[#allocation8_spill] sm:$0xff] }
  0x52   :  { %581 = vmatpush.msra.mxu1 %v800_v9  ;;  %543 = vmatpush.msra.mxu0 %v1252_v3  ;;  %v1255_v9 = vld [vmem:[#allocation5_spill] sm:$0xff] }
  0x53   :  { %693 = vmatpush.msra.mxu3 %v804_v11  ;;  %624 = vmatpush.msra.mxu2 %v845_v24 }
  0x54   :  { %583 = vmatpush.msra.mxu1 %v802_v10  ;;  %546 = vmatpush.msra.mxu0 %v1253_v4  ;;  %v1256_v10 = vld [vmem:[#allocation6_spill] sm:$0xff] }
  0x55   :  { %695 = vmatpush.msra.mxu3 %v822_v17  ;;  %628 = vmatpush.msra.mxu2 %v854_v27 }
  0x56   :  { %585 = vmatpush.msra.mxu1 %v804_v11  ;;  %549 = vmatpush.msra.mxu0 %v1254_v5  ;;  %v1257_v11 = vld [vmem:[#allocation7_spill] sm:$0xff] }
  0x57   :  { %697 = vmatpush.msra.mxu3 %v847_v25  ;;  %632 = vmatpush.msra.mxu2 %v870_v33 }
  0x58   :  { %587 = vmatpush.msra.mxu1 %v822_v17  ;;  %552 = vmatpush.msra.mxu0 %v1255_v9 }
  0x59   :  { %699 = vmatpush.msra.mxu3 %v856_v28  ;;  %636 = vmatpush.msra.mxu2 %v874_v34 }
  0x5a   :  { %589 = vmatpush.msra.mxu1 %v847_v25  ;;  %555 = vmatpush.msra.mxu0 %v1256_v10 }
  0x5b   :  { %701 = vmatpush.msra.mxu3 %v876_v35  ;;  %640 = vmatpush.msra.mxu2 %v894_v41 }
  0x5c   :  { %591 = vmatpush.msra.mxu1 %v856_v28  ;;  %558 = vmatpush.msra.mxu0 %v1257_v11 }
  0x5d   :  { %703 = vmatpush.msra.mxu3 %v906_v45  ;;  %644 = vmatpush.msra.mxu2 %v923_v50 }
  0x5e   :  { %593 = vmatpush.msra.mxu1 %v876_v35  ;;  %561 = vmatpush.msra.mxu0 %v1258_v14 }
  0x5f   :  { %705 = vmatpush.msra.mxu3 %v925_v51  ;;  %648 = vmatpush.msra.mxu2 %v944_v57 }
  0x60   :  { %595 = vmatpush.msra.mxu1 %v906_v45  ;;  %564 = vmatpush.msra.mxu0 %v1023_v47 }
  0x61   :  { %707 = vmatpush.msra.mxu3 %v932_v54  ;;  %652 = vmatpush.msra.mxu2 %v961_v62 }
  0x62   :  { %597 = vmatpush.msra.mxu1 %v925_v51  ;;  %567 = vmatpush.msra.mxu0 %v1039_v60 }
  0x63   :  { %709 = vmatpush.msra.mxu3 %v963_v63  ;;  %656 = vmatpush.msra.mxu2 %v988_v12 }
  0x64   :  { %599 = vmatpush.msra.mxu1 %v932_v54 }
  0x65   :  { %711 = vmatpush.msra.mxu3 %v990_v13  ;;  %660 = vmatpush.msra.mxu2 %v1006_v32 }
  0x66   :  { %601 = vmatpush.msra.mxu1 %v963_v63 }
  0x67   :  { %713 = vmatpush.msra.mxu3 %v995_v26  ;;  %664 = vmatpush.msra.mxu2 %v1012_v39 }
  0x68   :  { %603 = vmatpush.msra.mxu1 %v990_v13  ;;  %v747_v13 = vld [vmem:[%s1233_s1] ss:$0 sm:$0xff] }
  0x69   :  { %668 = vmatpush.msra.mxu2 %v1036_v61 }
  0x6a   :  { %605 = vmatpush.msra.mxu1 %v995_v26 }
  0x6b   :  { %672 = vmatpush.msra.mxu2 %v1050_v7 }
  0x6d   :  { %676 = vmatpush.msra.mxu2 %v1061_v58 }
  0xa4   :  { %v72_v16 = vpop.f32.mrf.mxu0 }
  0xa8   :  { %v173_v15 = vpop.f32.mrf.mxu1  ;;  %v266_v21 = vpop.f32.mrf.mxu3 }
  0xa9   :  { %v174_v17 = vadd.f32 %v173_v15, %v72_v16 }
  0xaa   :  { %v227_v19 = vpop.f32.mrf.mxu2 }
  0xab   :  { %v228_v20 = vadd.f32 %v227_v19, %v174_v17 }
  0xad   :  { %v267_v22 = vadd.f32 %v266_v21, %v228_v20 }
  0xc0   :  { %v335_v23 = vpop.f32.mrf.mxu0 }
  0xc1   :  { %v336_v24 = vadd.f32 %v335_v23, %v267_v22 }
  0xc8   :  { %v372_v25 = vpop.f32.mrf.mxu1 }
  0xc9   :  { %v373_v27 = vadd.f32 %v372_v25, %v336_v24 }
  0xcb   :  { %v375_v28 = vmul.f32 0.03125, %v373_v27 }
  0xcd   :  { %v376_v33 = vsub.f32 %v1259_v29, %v375_v28 }
  0xcf   :  { %v377_v34 = vmul.f32 %v376_v33, %v376_v33 }
  0xd1   :  { %v410_v35 = vand.u32 4294901760, %v377_v34 }
  0xd3   :  { %v411_v37 = vsub.f32 %v377_v34, %v410_v35  ;;  %516 = vmatmul.f32.vlgmr.msrb.gmra.mxu3 %v410_v35 }
  0xd5   :  { %570 = vmatmul.f32.vlgmr.msra.gmra.mxu0 %v411_v37  ;;  %v412_v38 = vand.u32 4294901760, %v411_v37 }
  0xd7   :  { %609 = vmatmul.f32.vlgmr.msra.gmra.mxu1 %v412_v38  ;;  %v413_v40 = vsub.f32 %v411_v37, %v412_v38 }
  0xd9   :  { %v414_v41 = vand.u32 4294901760, %v413_v40 }
  0xdb   :  { %415 = vmatmul.f32.vlgmr.msrb.gmra.mxu2 %v414_v41  ;;  %715 = vmatmul.f32.vlgmr.msra.gmra.mxu3 %v410_v35 }
  0xe3   :  { %678 = vmatmul.f32.vlgmr.msra.gmra.mxu2 %v410_v35 }
 0x152   :  { %v571_v49 = vpop.f32.mrf.mxu0 }
 0x154   :  { %v610_v51 = vpop.f32.mrf.mxu1 }
 0x156   :  { %v517_v43 = vpop.f32.mrf.mxu3 }
 0x15e   :  { %v416_v45 = vpop.f32.mrf.mxu2  ;;  %v716_v57 = vpop.f32.mrf.mxu3 }
 0x15f   :  { %v518_v46 = vadd.f32 %v517_v43, %v416_v45 }
 0x161   :  { %v572_v50 = vadd.f32 %v571_v49, %v518_v46 }
 0x163   :  { %v611_v52 = vadd.f32 %v610_v51, %v572_v50 }
 0x166   :  { %v679_v54 = vpop.f32.mrf.mxu2 }
 0x167   :  { %v680_v56 = vadd.f32 %v679_v54, %v611_v52 }
 0x169   :  { %v717_v58 = vadd.f32 %v716_v57, %v680_v56 }
 0x16b   :  { %v719_v59 = vmul.f32 0.03125, %v717_v58 }
 0x16d   :  { %v720_v62 = vadd.f32 1e-05, %v719_v59 }
 0x16f   :  { %749 = vrsqrt.f32 %v720_v62  ;;  %vm727_vm1 = vweird.f32 %v720_v62 }
 0x175   :  { %v750_v63 = vpop.eup %749 }
 0x176   :  { %v722_v0 = vmul.f32 %v750_v63, %v720_v62  ;;  %vm728_vm0 = vweird.f32 %v750_v63 }
 0x177   :  { %vm729_vm2 = vmor %vm727_vm1, %vm728_vm0 }
 0x178   :  { %v723_v2 = vmul.f32 %v750_v63, %v722_v0 }
 0x17a   :  { %v724_v6 = vmul.f32 0.5, %v723_v2 }
 0x17c   :  { %v725_v7 = vsub.f32 1.5, %v724_v6 }
 0x17e   :  { %v726_v12 = vmul.f32 %v750_v63, %v725_v7 }
 0x180   :  { %v730_v18 = vsel %vm729_vm2, %v750_v63, %v726_v12 }
 0x181   :  { %v731_v26 = vmul.f32 %v730_v18, %v376_v33 }
 0x183   :  { %v736_v32 = vmul.f32 %v747_v13, %v731_v26 }
 0x185   :  { %v741_v36 = vadd.f32 %v748_v30, %v736_v32 }
 0x187   :  { %742 = vst [vmem:[%s1235_s4] sm:$0xf] %v741_v36 }

</bundles_post_ra>
